<compile_context>
chip_gen: v6e
topology: v6e:2x2x1
jax: 0.10.0
libtpu: 0.0.40
codegen_flags: <defaults>
</compile_context>

<pallas_src>
import functools

import jax
import jax.numpy as jnp
from jax.experimental import pallas as pl
from jax.experimental.pallas import tpu as pltpu


def _actor_critic_kernel(x_ref, w1_ref, b1_ref, wh_ref, bh_ref, out_ref, *, action_size):
    # Trunk: x @ W1 + b1 -> ReLU   (MXU matmul, f32 accumulate; VPU relu)
    h = jnp.dot(x_ref[...], w1_ref[...], preferred_element_type=jnp.float32) + b1_ref[...]
    h = jnp.maximum(h, 0.0)

    # Fused heads: one lane-dense matmul produces [action logits | value | pad].
    out = jnp.dot(h, wh_ref[...], preferred_element_type=jnp.float32) + bh_ref[...]

    # Softmax over the action columns only (padded / value columns masked to -inf;
    # fine in f32: exp(-inf) == 0).
    col = jax.lax.broadcasted_iota(jnp.int32, out.shape, 1)
    is_action = col < action_size
    logits = jnp.where(is_action, out, -jnp.inf)
    m = jnp.max(logits, axis=1, keepdims=True)
    e = jnp.exp(logits - m)
    denom = jnp.sum(e, axis=1, keepdims=True)
    probs = e / denom  # exact reciprocal: probabilities sum to 1 for CDF sampling

    # Lane-dense store: [probs (A) | value (1) | zeros (pad)] -> unmasked vst.
    result = jnp.where(is_action, probs, jnp.where(col == action_size, out, 0.0))
    out_ref[...] = result.astype(out_ref.dtype)


def prepare_actor_critic_params(w1, b1, w2, b2, w3, b3):
    """One-time (init / per param update) fusion of the two heads into a single
    lane-dense (H, 128k) weight + bias.  Keeps the per-call forward wrapper free of
    pad/scatter/cast ops.  Returns (w1, b1, w_head, b_head, action_size)."""
    S, H = w1.shape
    A = w2.shape[1]
    Np = max(128, pl.cdiv(A + 1, 128) * 128)  # lane-dense padded head width

    w_head = (jnp.zeros((H, Np), jnp.float32)
              .at[:, :A].set(w2.astype(jnp.float32))
              .at[:, A:A + 1].set(w3.astype(jnp.float32)))
    b_head = (jnp.zeros((1, Np), jnp.float32)
              .at[:, :A].set(b2.reshape(1, A).astype(jnp.float32))
              .at[:, A:A + 1].set(b3.reshape(1, 1).astype(jnp.float32)))

    return (w1.astype(jnp.float32),
            b1.reshape(1, H).astype(jnp.float32),
            w_head, b_head, A)


def actor_critic_forward(x, prepared, *, block_b=None):
    """x: (B, state_size) f32.  `prepared` from prepare_actor_critic_params().
    Returns (action_probs (B, A), value (B, 1)) in f32.

    block_b=None -> single whole-batch tile (best on 1-TC v5e/v6e for B up to a few K).
    For v7x (2 TensorCores) or very large B, pass block_b so the grid has >= 2
    balanced 'parallel' steps (e.g. block_b = B // (2*steps_per_core))."""
    w1, b1, w_head, b_head, A = prepared
    B, S = x.shape
    H = w1.shape[1]
    Np = w_head.shape[1]

    # Tile selection: one big tile by default; otherwise 8-aligned block_b tiles
    # (pad B up if needed; padded rows are sliced off afterwards).
    if block_b is None or block_b >= B:
        tb = B
        Bp = B
        xk = x
    else:
        tb = max(8, (block_b // 8) * 8)
        Bp = pl.cdiv(B, tb) * tb
        xk = jnp.pad(x, ((0, Bp - B), (0, 0))) if Bp != B else x
    grid = (Bp // tb,)

    kernel = functools.partial(_actor_critic_kernel, action_size=A)

    cost = pl.CostEstimate(
        flops=2 * Bp * S * H + 2 * Bp * H * Np + 6 * Bp * Np,
        transcendentals=Bp * Np,
        bytes_accessed=4 * (Bp * S + S * H + H + H * Np + Np + Bp * Np),
    )

    out = pl.pallas_call(
        kernel,
        out_shape=jax.ShapeDtypeStruct((Bp, Np), jnp.float32),
        grid=grid,
        in_specs=[
            pl.BlockSpec((tb, S), lambda i: (i, 0)),   # x: tiled over batch
            pl.BlockSpec((S, H), lambda i: (0, 0)),    # w1: resident
            pl.BlockSpec((1, H), lambda i: (0, 0)),    # b1: resident
            pl.BlockSpec((H, Np), lambda i: (0, 0)),   # fused head weight: resident
            pl.BlockSpec((1, Np), lambda i: (0, 0)),   # fused head bias: resident
        ],
        out_specs=pl.BlockSpec((tb, Np), lambda i: (i, 0)),
        compiler_params=pltpu.CompilerParams(
            dimension_semantics=("parallel",),         # shard batch tiles across TCs (v7x)
        ),
        cost_estimate=cost,
    )(xk, w1, b1, w_head, b_head)

    probs = out[:B, :A]
    value = out[:B, A:A + 1]
    return probs, value


def init_params(key, state_size, hidden, action_size):
    """Deterministic PyTorch-style Linear init: U(-1/sqrt(fan_in), 1/sqrt(fan_in))."""
    ks = jax.random.split(key, 6)

    def linear(kw, kb, fan_in, fan_out):
        bound = 1.0 / jnp.sqrt(jnp.float32(fan_in))
        w = jax.random.uniform(kw, (fan_in, fan_out), jnp.float32, -bound, bound)
        b = jax.random.uniform(kb, (1, fan_out), jnp.float32, -bound, bound)
        return w, b

    w1, b1 = linear(ks[0], ks[1], state_size, hidden)
    w2, b2 = linear(ks[2], ks[3], hidden, action_size)
    w3, b3 = linear(ks[4], ks[5], hidden, 1)
    return w1, b1, w2, b2, w3, b3


if __name__ == "__main__":
    # CartPole-like sizes: state_size=4, action_size=2, hidden=128 (fixed by module).
    S, H, A = 4, 128, 2

    key = jax.random.PRNGKey(0)
    kx, kp, kx2 = jax.random.split(key, 3)
    w1, b1, w2, b2, w3, b3 = init_params(kp, S, H, A)

    # One-time head fusion / cast (hoisted out of the forward hot path).
    prepared = jax.block_until_ready(
        prepare_actor_critic_params(w1, b1, w2, b2, w3, b3))

    def ref_forward(xr):
        h_ref = jnp.maximum(xr @ w1 + b1, 0.0)
        return jax.nn.softmax(h_ref @ w2 + b2, axis=1), h_ref @ w3 + b3

    # --- Small CartPole-sized check (B=2): single whole-batch tile. ---
    x_small = jax.random.normal(kx, (2, S), jnp.float32)
    probs, value = jax.block_until_ready(actor_critic_forward(x_small, prepared))
    probs_ref, value_ref = ref_forward(x_small)
    assert probs.shape == (2, A) and value.shape == (2, 1)
    assert jnp.allclose(probs, probs_ref, atol=1e-5), "action probs mismatch (small)"
    assert jnp.allclose(value, value_ref, atol=1e-5), "value mismatch (small)"
    assert jnp.allclose(jnp.sum(probs, axis=1), 1.0, atol=1e-6), "probs do not sum to 1"

    # --- Batched rollout-sized check (B=512): explicit tiling to exercise the
    #     gridded 'parallel' path (e.g. 4 balanced tiles -> 2 per TC on v7x). ---
    x_big = jax.random.normal(kx2, (512, S), jnp.float32)
    probs_b, value_b = jax.block_until_ready(
        actor_critic_forward(x_big, prepared, block_b=128))
    probs_bref, value_bref = ref_forward(x_big)
    assert probs_b.shape == (512, A) and value_b.shape == (512, 1)
    assert jnp.allclose(probs_b, probs_bref, atol=1e-5), "action probs mismatch (batched)"
    assert jnp.allclose(value_b, value_bref, atol=1e-5), "value mismatch (batched)"

    print("KERNEL_OK")
</pallas_src>

<mosaic_0001>
module attributes {stable_mosaic.version = 11 : i64} {
  func.func @_actor_critic_kernel(%arg0: i32, %arg1: memref<2x4xf32, #tpu.memory_space<vmem>>, %arg2: memref<4x128xf32, #tpu.memory_space<vmem>>, %arg3: memref<1x128xf32, #tpu.memory_space<vmem>>, %arg4: memref<128x128xf32, #tpu.memory_space<vmem>>, %arg5: memref<1x128xf32, #tpu.memory_space<vmem>>, %arg6: memref<2x128xf32, #tpu.memory_space<vmem>>) attributes {dimension_semantics = [#tpu.dimension_semantics<parallel>], iteration_bounds = array<i64: 1>, scalar_prefetch = 0 : i64, scratch_operands = 0 : i64, tpu.core_type = #tpu.core_type<tc>, window_params = [{transform_indices = @transform_0, window_bounds = array<i64: 2, 4>}, {pipeline_mode = #tpu.pipeline_mode<synchronous>, transform_indices = @transform_1, window_bounds = array<i64: 4, 128>}, {pipeline_mode = #tpu.pipeline_mode<synchronous>, transform_indices = @transform_2, window_bounds = array<i64: 1, 128>}, {pipeline_mode = #tpu.pipeline_mode<synchronous>, transform_indices = @transform_3, window_bounds = array<i64: 128, 128>}, {pipeline_mode = #tpu.pipeline_mode<synchronous>, transform_indices = @transform_4, window_bounds = array<i64: 1, 128>}, {transform_indices = @transform_5, window_bounds = array<i64: 2, 128>}]} {
    %c0 = arith.constant 0 : index
    %c0_0 = arith.constant 0 : index
    %0 = vector.load %arg1[%c0, %c0_0] : memref<2x4xf32, #tpu.memory_space<vmem>>, vector<2x4xf32>
    %c0_1 = arith.constant 0 : index
    %c0_2 = arith.constant 0 : index
    %1 = vector.load %arg2[%c0_1, %c0_2] : memref<4x128xf32, #tpu.memory_space<vmem>>, vector<4x128xf32>
    %cst = arith.constant dense<0.000000e+00> : vector<2x128xf32>
    %2 = tpu.matmul %0, %1, %cst {dimension_numbers = #tpu.dot_dimension_numbers<[1], [0], [0], [1], [0, 0, 1, 1], [], []>} : vector<2x4xf32>, vector<4x128xf32>, vector<2x128xf32> -> vector<2x128xf32>
    %c0_3 = arith.constant 0 : index
    %c0_4 = arith.constant 0 : index
    %3 = vector.load %arg3[%c0_3, %c0_4] : memref<1x128xf32, #tpu.memory_space<vmem>>, vector<1x128xf32>
    %4 = vector.broadcast %3 : vector<1x128xf32> to vector<2x128xf32>
    %5 = arith.addf %2, %4 : vector<2x128xf32>
    %cst_5 = arith.constant 0.000000e+00 : f32
    %6 = vector.broadcast %cst_5 : f32 to vector<2x128xf32>
    %7 = arith.maximumf %5, %6 : vector<2x128xf32>
    %c0_6 = arith.constant 0 : index
    %c0_7 = arith.constant 0 : index
    %8 = vector.load %arg4[%c0_6, %c0_7] : memref<128x128xf32, #tpu.memory_space<vmem>>, vector<128x128xf32>
    %cst_8 = arith.constant dense<0.000000e+00> : vector<2x128xf32>
    %9 = tpu.matmul %7, %8, %cst_8 {dimension_numbers = #tpu.dot_dimension_numbers<[1], [0], [0], [1], [0, 0, 1, 1], [], []>} : vector<2x128xf32>, vector<128x128xf32>, vector<2x128xf32> -> vector<2x128xf32>
    %c0_9 = arith.constant 0 : index
    %c0_10 = arith.constant 0 : index
    %10 = vector.load %arg5[%c0_9, %c0_10] : memref<1x128xf32, #tpu.memory_space<vmem>>, vector<1x128xf32>
    %11 = vector.broadcast %10 : vector<1x128xf32> to vector<2x128xf32>
    %12 = arith.addf %9, %11 : vector<2x128xf32>
    %13 = tpu.iota {dimensions = array<i32: 1>} : vector<2x128xi32>
    %c2_i32 = arith.constant 2 : i32
    %14 = vector.broadcast %c2_i32 : i32 to vector<2x128xi32>
    %15 = arith.cmpi slt, %13, %14 : vector<2x128xi32>
    %cst_11 = arith.constant 0xFF800000 : f32
    %16 = vector.broadcast %cst_11 : f32 to vector<2x128xf32>
    %17 = arith.select %15, %12, %16 : vector<2x128xi1>, vector<2x128xf32>
    %cst_12 = arith.constant dense<0xFF800000> : vector<2xf32>
    %18 = vector.multi_reduction <maximumf>, %17, %cst_12 [1] : vector<2x128xf32> to vector<2xf32>
    %19 = vector.shape_cast %18 : vector<2xf32> to vector<2x1xf32>
    %20 = vector.broadcast %19 : vector<2x1xf32> to vector<2x128xf32>
    %21 = arith.subf %17, %20 : vector<2x128xf32>
    %22 = math.exp %21 : vector<2x128xf32>
    %cst_13 = arith.constant dense<0.000000e+00> : vector<2xf32>
    %23 = vector.multi_reduction <add>, %22, %cst_13 [1] : vector<2x128xf32> to vector<2xf32>
    %24 = vector.shape_cast %23 : vector<2xf32> to vector<2x1xf32>
    %25 = vector.broadcast %24 : vector<2x1xf32> to vector<2x128xf32>
    %26 = arith.divf %22, %25 : vector<2x128xf32>
    %c2_i32_14 = arith.constant 2 : i32
    %27 = vector.broadcast %c2_i32_14 : i32 to vector<2x128xi32>
    %28 = arith.cmpi eq, %13, %27 : vector<2x128xi32>
    %cst_15 = arith.constant 0.000000e+00 : f32
    %29 = vector.broadcast %cst_15 : f32 to vector<2x128xf32>
    %30 = arith.select %28, %12, %29 : vector<2x128xi1>, vector<2x128xf32>
    %31 = arith.select %15, %26, %30 : vector<2x128xi1>, vector<2x128xf32>
    %c0_16 = arith.constant 0 : index
    %c0_17 = arith.constant 0 : index
    %32 = vector.load %arg6[%c0_16, %c0_17] : memref<2x128xf32, #tpu.memory_space<vmem>>, vector<2x128xf32>
    tpu.vector_store %arg6[%c0_16, %c0_17], %31 {strides = array<i32>} : memref<2x128xf32, #tpu.memory_space<vmem>>, vector<2x128xf32>,
    return
  }
  func.func @transform_0(%arg0: i32) -> (i32, i32) {
    %c0_i32 = arith.constant 0 : i32
    %c0_i32_0 = arith.constant 0 : i32
    return %arg0, %c0_i32 : i32, i32
  }
  func.func @transform_1(%arg0: i32) -> (i32, i32) {
    %c0_i32 = arith.constant 0 : i32
    %c0_i32_0 = arith.constant 0 : i32
    %c0_i32_1 = arith.constant 0 : i32
    return %c0_i32, %c0_i32_0 : i32, i32
  }
  func.func @transform_2(%arg0: i32) -> (i32, i32) {
    %c0_i32 = arith.constant 0 : i32
    %c0_i32_0 = arith.constant 0 : i32
    %c0_i32_1 = arith.constant 0 : i32
    return %c0_i32, %c0_i32_0 : i32, i32
  }
  func.func @transform_3(%arg0: i32) -> (i32, i32) {
    %c0_i32 = arith.constant 0 : i32
    %c0_i32_0 = arith.constant 0 : i32
    %c0_i32_1 = arith.constant 0 : i32
    return %c0_i32, %c0_i32_0 : i32, i32
  }
  func.func @transform_4(%arg0: i32) -> (i32, i32) {
    %c0_i32 = arith.constant 0 : i32
    %c0_i32_0 = arith.constant 0 : i32
    %c0_i32_1 = arith.constant 0 : i32
    return %c0_i32, %c0_i32_0 : i32, i32
  }
  func.func @transform_5(%arg0: i32) -> (i32, i32) {
    %c0_i32 = arith.constant 0 : i32
    %c0_i32_0 = arith.constant 0 : i32
    return %arg0, %c0_i32 : i32, i32
  }
}

</mosaic_0001>

<bundles_post_ra>
// kernel: tpu_custom_call.1
= control target key start
LH: loop header
LB: loop body
LE: loop exit
PB: predicated region body
PF: predicated region fallthrough
CT: control target
= control target key end

     0   :  { %10 = vsyncpa [#allocation3], 0  ;;  %s494_s0 = inlined_call_operand.hbm [shape: f32[2,4], index: 0, kind: input, shape index: {}]   ;;  %s495_s1 = inlined_call_operand.hbm [shape: f32[4,128], index: 1, kind: input, shape index: {}]   ;;  %s496_s2 = inlined_call_operand.vmem [shape: f32[1,128], index: 2, kind: input, shape index: {}]   ;;  %s497_s3 = inlined_call_operand.hbm [shape: f32[128,128], index: 3, kind: input, shape index: {}]   ;;  %s498_s4 = inlined_call_operand.vmem [shape: f32[1,128], index: 4, kind: input, shape index: {}]   ;;  %s499_s5 = inlined_call_operand.hbm [shape: f32[2,128], index: 5, kind: output, shape index: {}]  }
   0x1   :  { %11 = vsyncpa [#allocation6], 0 }
   0x2   :  { %12 = vsyncpa [#allocation4], 0  ;;  %s436_s18 = smov [#allocation5]   ;;  %s437_s20 = smov [#allocation2]  }
   0x3   :  { %s29_s19 = sshll.u32 %s436_s18, 4  ;;  %s19_s21 = sshll.u32 %s437_s20, 4  ;;  %s30_s19 = int_to_ptr.vmem [resolvable:$true] %s29_s19  ;;  %s20_s21 = int_to_ptr.vmem [resolvable:$true] %s19_s21 }
   0x4   :  { %s358_s22 = scalar_lea.vmem %s30_s19, 64  ;;  %p363_p1 = scmp.lt.s32.totalorder %s30_s19, %s30_s19 }
   0x5   :  { %p359_p0 = scmp.ne.s32.totalorder %s30_s19, %s358_s22  ;;  %p364_p2 = scmp.lt.s32.totalorder %s358_s22, %s358_s22 }
   0x7   :  { %p365_p3 = por %p364_p2, %p363_p1 }
   0x9   :  { %p366_p4 = pnand %p365_p3, %p359_p0 }
   0xb   :  { %369 = shalt.err (!%p366_p4)
}
   0xc   :  { %32 = dma.hbm_to_vmem [thread:$0]  %s495_s1, 64, %s30_s19, [#allocation6]  }
   0xd   :  { %s378_s25 = scalar_lea.vmem %s20_s21, 32  ;;  %p383_p6 = scmp.lt.s32.totalorder %s20_s21, %s20_s21 }
   0xe   :  { %p379_p5 = scmp.ne.s32.totalorder %s20_s21, %s378_s25  ;;  %p384_p7 = scmp.lt.s32.totalorder %s378_s25, %s378_s25 }
  0x10   :  { %p385_p8 = por %p384_p7, %p383_p6 }
  0x12   :  { %p386_p9 = pnand %p385_p8, %p379_p5 }
  0x14   :  { %389 = shalt.err (!%p386_p9)
}
  0x15   :  { %22 = dma.hbm_to_vmem [thread:$0]  %s494_s0, 32, %s20_s21, [#allocation3]  }
  0x16   :  { %s438_s28 = smov [#allocation7]  }
  0x17   :  { %s40_s29 = sshll.u32 %s438_s28, 4  ;;  %s41_s29 = int_to_ptr.vmem [resolvable:$true] %s40_s29 }
  0x18   :  { %s398_s30 = scalar_lea.vmem %s41_s29, 2048  ;;  %p403_p11 = scmp.lt.s32.totalorder %s41_s29, %s41_s29 }
  0x19   :  { %p399_p10 = scmp.ne.s32.totalorder %s41_s29, %s398_s30  ;;  %p404_p12 = scmp.lt.s32.totalorder %s398_s30, %s398_s30 }
  0x1b   :  { %p405_p13 = por %p404_p12, %p403_p11 }
  0x1d   :  { %p406_p0 = pnand %p405_p13, %p399_p10 }
  0x1f   :  { %409 = shalt.err (!%p406_p0)
}
  0x20   :  { %s439_s1 = smov 128   ;;  %s440_s6 = smov 8  }
  0x21   :  { %46 = dma.hbm_to_vmem [thread:$0]  %s497_s3, 2048, %s41_s29, [#allocation6], %s439_s1, %s439_s1, %s440_s6  }
  0x22   :  { %430 = dma.done.wait [#allocation3], 32  }
  0x23   :  { %431 = vsyncadd [#allocation3], 4294967264 }
  0x24   :  { %432 = dma.done.wait [#allocation6], 2112  }
  0x25   :  { %433 = vsyncadd [#allocation6], 4294965184  ;;  %v441_v0 = vmov 0.0   ;;  %vm442_vm0 = vmmov 0   ;;  %vm71_vm1 = vcmask 1043456   ;;  %vm67_vm2 = vcmask 31744  }
  0x26   :  { %298 = vmatprep.subr.mxu0 %v441_v0  ;;  %300 = vmatprep.mubr.msk.f32.mxu0 %vm442_vm0, %v441_v0  ;;  %v59_v1 = vld [vmem:[#allocation5] sm:$0xf]  ;;  %v58_v2 = vld [vmem:[#allocation2] sm:$0x3]  ;;  %v160_v4 = vld [vmem:[#allocation7 + $0x70] sm:$0xff]  ;;  %v239_v24 = vlaneseq  ;;  %vm243_vm5 = vcmask 1041408  }
  0x27   :  { %303 = vmatprep.subr.mxu1 %v441_v0  ;;  %335 = vmatprep.mubr.msk.f32.mxu1 %vm442_vm0, %v441_v0  ;;  %v161_v3 = vld [vmem:[#allocation7 + $0x78] sm:$0xff]  ;;  %v159_v5 = vld [vmem:[#allocation7 + $0x68] sm:$0xff]  ;;  %v158_v6 = vld [vmem:[#allocation7 + $0x60] sm:$0xff] }
  0x28   :  { %299 = vmatpush3.msk.msra.mxu0 %vm71_vm1, %v59_v1  ;;  %304 = vmatpush3.msra.mxu1 %v161_v3  ;;  %v157_v7 = vld [vmem:[#allocation7 + $0x58] sm:$0xff]  ;;  %v156_v8 = vld [vmem:[#allocation7 + $0x50] sm:$0xff]  ;;  %v155_v9 = vld [vmem:[#allocation7 + $0x48] sm:$0xff]  ;;  %v240_v25 = vand.u32 127, %v239_v24 }
  0x29   :  { %301 = vmatmul.mubr.msk.f32.vlgmr.msra.gmra.mxu0 %vm67_vm2, %v58_v2  ;;  %305 = vmatprep.subr.mxu1 %v441_v0  ;;  %v154_v10 = vld [vmem:[#allocation7 + $0x40] sm:$0xff]  ;;  %v153_v11 = vld [vmem:[#allocation7 + $0x38] sm:$0xff]  ;;  %v152_v12 = vld [vmem:[#allocation7 + $0x30] sm:$0xff] }
  0x2a   :  { %306 = vmatpush3.msra.mxu1 %v160_v4  ;;  %v151_v13 = vld [vmem:[#allocation7 + $0x28] sm:$0xff]  ;;  %v150_v14 = vld [vmem:[#allocation7 + $0x20] sm:$0xff]  ;;  %v149_v15 = vld [vmem:[#allocation7 + $0x18] sm:$0xff]  ;;  %vm255_vm3 = vcmp.eq.s32.totalorder %v240_v25, 2  ;;  %vm241_vm4 = vcmp.lt.s32.totalorder %v240_v25, 2 }
  0x2b   :  { %307 = vmatprep.subr.mxu1 %v441_v0  ;;  %v148_v16 = vld [vmem:[#allocation7 + $0x10] sm:$0xff]  ;;  %v147_v17 = vld [vmem:[#allocation7 + $0x8] sm:$0xff]  ;;  %v146_v18 = vld [vmem:[#allocation7] sm:$0xff] }
  0x2c   :  { %308 = vmatpush3.msra.mxu1 %v159_v5  ;;  %v275_v19 = vld [vmem:[%s496_s2] ss:$0 sm:$0xff]  ;;  %s443_s2 = smov [#allocation8]  }
  0x2d   :  { %309 = vmatprep.subr.mxu1 %v441_v0  ;;  %v278_v26 = vld [vmem:[%s498_s4] ss:$0 sm:$0xff]  ;;  %s265_s4 = sshll.u32 %s443_s2, 4  ;;  %s266_s4 = int_to_ptr.vmem [resolvable:$true] %s265_s4 }
  0x2e   :  { %310 = vmatpush3.msra.mxu1 %v158_v6  ;;  %s410_s11 = scalar_lea.vmem %s266_s4, 32  ;;  %p415_p2 = scmp.lt.s32.totalorder %s266_s4, %s266_s4 }
  0x2f   :  { %311 = vmatprep.subr.mxu1 %v441_v0  ;;  %p411_p1 = scmp.ne.s32.totalorder %s266_s4, %s410_s11  ;;  %p416_p3 = scmp.lt.s32.totalorder %s410_s11, %s410_s11 }
  0x30   :  { %312 = vmatpush3.msra.mxu1 %v157_v7 }
  0x31   :  { %313 = vmatprep.subr.mxu1 %v441_v0  ;;  %p417_p4 = por %p416_p3, %p415_p2 }
  0x32   :  { %314 = vmatpush3.msra.mxu1 %v156_v8 }
  0x33   :  { %315 = vmatprep.subr.mxu1 %v441_v0  ;;  %p418_p5 = pnand %p417_p4, %p411_p1 }
  0x34   :  { %316 = vmatpush3.msra.mxu1 %v155_v9 }
  0x35   :  { %317 = vmatprep.subr.mxu1 %v441_v0 }
  0x36   :  { %318 = vmatpush3.msra.mxu1 %v154_v10 }
  0x37   :  { %319 = vmatprep.subr.mxu1 %v441_v0 }
  0x38   :  { %320 = vmatpush3.msra.mxu1 %v153_v11 }
  0x39   :  { %321 = vmatprep.subr.mxu1 %v441_v0 }
  0x3a   :  { %322 = vmatpush3.msra.mxu1 %v152_v12 }
  0x3b   :  { %323 = vmatprep.subr.mxu1 %v441_v0 }
  0x3c   :  { %324 = vmatpush3.msra.mxu1 %v151_v13 }
  0x3d   :  { %325 = vmatprep.subr.mxu1 %v441_v0 }
  0x3e   :  { %326 = vmatpush3.msra.mxu1 %v150_v14 }
  0x3f   :  { %327 = vmatprep.subr.mxu1 %v441_v0 }
  0x40   :  { %328 = vmatpush3.msra.mxu1 %v149_v15 }
  0x41   :  { %329 = vmatprep.subr.mxu1 %v441_v0 }
  0x42   :  { %330 = vmatpush3.msra.mxu1 %v148_v16 }
  0x43   :  { %331 = vmatprep.subr.mxu1 %v441_v0 }
  0x44   :  { %332 = vmatpush3.msra.mxu1 %v147_v17 }
  0x45   :  { %333 = vmatprep.subr.mxu1 %v441_v0 }
  0x46   :  { %334 = vmatpush3.msra.mxu1 %v146_v18 }
  0xe9   :  { %v141_v20 = vpop.f32.mrf.mxu0 }
  0xea   :  { %v142_v21 = vadd.f32 %v275_v19, %v141_v20 }
  0xeb   :  { %v302_v22 = vpop.f32.mrf.mxu0 }
  0xec   :  { %v145_v23 = vmax.f32 %v142_v21, 0.0 }
  0xee   :  { %336 = vmatmul.mubr.f32.vlgmr.msra.gmra.mxu1 %v145_v23 }
 0x1ae   :  { %v235_v27 = vpop.f32.mrf.mxu1 }
 0x1af   :  { %v236_v28 = vadd.f32 %v278_v26, %v235_v27 }
 0x1b0   :  { %v337_v29 = vpop.f32.mrf.mxu1 }
 0x1b1   :  { %v256_v30 = vsel %vm255_vm3, %v236_v28, 0.0  ;;  %v242_v31 = vsel %vm241_vm4, %v236_v28, -inf }
 0x1b2   :  { %v244_v32 = vsel %vm243_vm5, %v242_v31, -inf }
 0x1b3   :  { %245 = vmax.xlane.f32.xlu0 %v244_v32 }
 0x23c   :  { %v246_v33 = vpop.xlane.xlu0 %245 }
 0x23d   :  { %v247_v34 = vsub.f32 %v242_v31, %v246_v33 }
 0x23f   :  { %v248_v35 = vmul.f32 1.442695, %v247_v34 }
 0x241   :  { %346 = vpow2.f32 %v248_v35 }
 0x24e   :  { %v347_v36 = vpop.eup %346 }
 0x24f   :  { %v250_v37 = vsel %vm243_vm5, %v347_v36, 0.0 }
 0x250   :  { %251 = vadd.xlane.f32.xlu0 %v250_v37 }
 0x2d9   :  { %v252_v38 = vpop.xlane.xlu0 %251 }
 0x2da   :  { %348 = vrcp.f32 %v252_v38 }
 0x2e7   :  { %v349_v39 = vpop.eup %348 }
 0x2e8   :  { %v254_v40 = vmul.f32 %v349_v39, %v347_v36 }
 0x2ea   :  { %v257_v41 = vsel %vm241_vm4, %v254_v40, %v256_v30 }
 0x2eb   :  { %258 = vst [vmem:[#allocation8] sm:$0x3] %v257_v41 }
 0x2ec   :  { %421 = shalt.err (!%p418_p5)
}
 0x2ed   :  { %268 = dma.vmem_to_hbm [thread:$0]  %s266_s4, 32, %s499_s5, [#allocation4]  }
 0x2ee   :  { %434 = dma.done.wait [#allocation4], 32  }
 0x2ef   :  { %435 = vsyncadd [#allocation4], 4294967264 }
 0x2f0   :  { %272 = vsyncpa [#allocation3], 1 }
 0x2f1   :  { %273 = vsyncpa [#allocation6], 1 }
 0x2f2   :  { %274 = vsyncpa [#allocation4], 1 }

</bundles_post_ra>
